<compile_context>
chip_gen: v6e
topology: v6e:2x2x1
jax: 0.10.0
libtpu: 0.0.40
codegen_flags: <defaults>
</compile_context>

<pallas_src>
import math

import jax
import jax.numpy as jnp
from jax.experimental import pallas as pl
from jax.experimental.pallas import tpu as pltpu

_NEG_BIG = -1e30  # finite "minus infinity": safe even for fully-masked rows


# ---------------------------------------------------------------------------
# Kernel 1: fused QKV projection, head-major bf16 outputs
# ---------------------------------------------------------------------------
def qkv_proj_kernel(x_ref, wqkv_ref, q_ref, k_ref, v_ref):
    """Grid = (batch, seq_tiles).

    x_ref    : (1, tp, C)     bf16
    wqkv_ref : (C, 3C)        bf16   pre-transposed [Wq^T | Wk^T | Wv^T]
    q/k/v_ref: (1, H, tp, Hs) bf16   head-major outputs; q is pre-scaled.
    """
    tp = x_ref.shape[1]
    C = x_ref.shape[2]
    H = q_ref.shape[1]
    Hs = q_ref.shape[3]

    x = x_ref[0]                                                     # (tp, C)
    qkv = jnp.dot(x, wqkv_ref[...],
                  preferred_element_type=jnp.float32)                # (tp, 3C)

    # Scale matches the PyTorch module: 1/sqrt(C) (embedding dim).
    q = qkv[:, :C] * (1.0 / math.sqrt(C))
    k = qkv[:, C:2 * C]
    v = qkv[:, 2 * C:]

    # Head split / relayout happens ONCE per (batch, seq tile) here, never in
    # the flash kernel's kv loop.
    q_ref[0] = jnp.swapaxes(q.reshape(tp, H, Hs), 0, 1).astype(q_ref.dtype)
    k_ref[0] = jnp.swapaxes(k.reshape(tp, H, Hs), 0, 1).astype(k_ref.dtype)
    v_ref[0] = jnp.swapaxes(v.reshape(tp, H, Hs), 0, 1).astype(v_ref.dtype)


# ---------------------------------------------------------------------------
# Kernel 2: flash attention (causal, online softmax) + output projection
# ---------------------------------------------------------------------------
def flash_attn_kernel(q_ref, k_ref, v_ref, wp_ref, bp_ref, o_ref,
                      m_sc, l_sc, acc_sc):
    """Grid = (batch, q_tiles, kv_tiles); kv axis is the sequential reduction.

    q_ref : (1, H, tq, Hs) bf16   pre-projected, pre-scaled query heads
    k_ref : (1, H, tk, Hs) bf16   pre-projected key heads
    v_ref : (1, H, tk, Hs) bf16   pre-projected value heads
    wp_ref: (C, C)  bf16          pre-transposed output projection
    bp_ref: (1, C)  f32           output projection bias
    o_ref : (1, tq, C)            output tile (written once, at last kv step)
    m_sc  : (H, tq, 1)  f32       running row max
    l_sc  : (H, tq, 1)  f32       running softmax denominator
    acc_sc: (H, tq, Hs) f32       running (unnormalized) attention output
    """
    H, tq, Hs = acc_sc.shape
    tk = k_ref.shape[2]

    qi = pl.program_id(1)
    ki = pl.program_id(2)

    @pl.when(ki == 0)
    def _init():
        m_sc[...] = jnp.full_like(m_sc, _NEG_BIG)
        l_sc[...] = jnp.zeros_like(l_sc)
        acc_sc[...] = jnp.zeros_like(acc_sc)

    # Skip kv tiles entirely above the causal diagonal (their HBM fetch is
    # also elided by the clamped kv index_map in the wrapper).
    @pl.when(ki * tk <= qi * tq + (tq - 1))
    def _compute():
        qh = q_ref[0]                                                # (H,tq,Hs)
        kh = k_ref[0]                                                # (H,tk,Hs)
        vh = v_ref[0]                                                # (H,tk,Hs)

        # Batched-over-heads scores, f32 accumulation.
        s = jnp.einsum('hqd,hkd->hqk', qh, kh,
                       preferred_element_type=jnp.float32)           # (H,tq,tk)

        # Per-tile causal mask from grid offsets (no full (T,T) mask).
        q_pos = qi * tq + jax.lax.broadcasted_iota(jnp.int32, (tq, tk), 0)
        k_pos = ki * tk + jax.lax.broadcasted_iota(jnp.int32, (tq, tk), 1)
        s = jnp.where((q_pos >= k_pos)[None, :, :], s, _NEG_BIG)

        # Online (flash) softmax update, state in f32.
        m_prev = m_sc[...]
        m_new = jnp.maximum(m_prev, s.max(axis=-1, keepdims=True))
        alpha = jnp.exp(m_prev - m_new)
        # TODO(synk): on v6e/v7x, doing this exp in bf16 roughly halves EUP
        # cost once it becomes the binding slot; kept f32 for accuracy.
        p = jnp.exp(s - m_new)                                       # (H,tq,tk)
        l_sc[...] = alpha * l_sc[...] + p.sum(axis=-1, keepdims=True)
        acc_sc[...] = alpha * acc_sc[...] + jnp.einsum(
            'hqk,hkd->hqd', p.astype(jnp.bfloat16), vh,
            preferred_element_type=jnp.float32)
        m_sc[...] = m_new

    @pl.when(ki == pl.num_programs(2) - 1)
    def _finalize():
        inv_l = pl.reciprocal(l_sc[...], approx=True)                # EUP, ~free
        oh = acc_sc[...] * inv_l                                     # (H,tq,Hs)
        # "concat heads" = head-major -> lane-major relayout, once per q tile.
        cat = jnp.swapaxes(oh, 0, 1).reshape(tq, H * Hs)             # (tq, C)
        y = jnp.dot(cat.astype(jnp.bfloat16), wp_ref[...],
                    preferred_element_type=jnp.float32) + bp_ref[...]
        # dropout: identity in eval mode
        o_ref[0] = y.astype(o_ref.dtype)                             # single store


# ---------------------------------------------------------------------------
# Wrapper
# ---------------------------------------------------------------------------
def _vmem_limit(estimate_bytes):
    # 2x headroom over the estimated resident set; floor 16 MiB, cap 128 MiB.
    return int(min(128 * 1024 * 1024, max(16 * 1024 * 1024, 2 * estimate_bytes)))


def multi_head_attention(x, wq, wk, wv, w_proj, b_proj, *,
                         q_tile=128, kv_tile=256, out_dtype=None):
    """x: (B, T, C) f32; wq/wk/wv: (H, Hs, C) (PyTorch out,in); w_proj: (C, C);
    b_proj: (C,).  Returns (B, T, C) in out_dtype (default x.dtype)."""
    B, T, C = x.shape
    H, Hs, _ = wq.shape
    assert H * Hs == C
    out_dtype = x.dtype if out_dtype is None else out_dtype

    tq = min(q_tile, T)
    tk = min(kv_tile, T)
    assert T % tq == 0 and T % tk == 0
    assert tq == T or tq % 8 == 0
    assert tk == T or tk % 8 == 0

    # Fused, pre-transposed (in, 3*out) QKV weight -> one MXU matmul in the
    # projection kernel; bf16 everywhere for native MXU rate.
    wqkv_t = jnp.concatenate(
        [jnp.transpose(wq.reshape(C, C)),
         jnp.transpose(wk.reshape(C, C)),
         jnp.transpose(wv.reshape(C, C))], axis=1).astype(jnp.bfloat16)
    wp_t = jnp.transpose(w_proj).astype(jnp.bfloat16)
    bp = b_proj.reshape(1, C).astype(jnp.float32)
    x_bf = x.astype(jnp.bfloat16)          # halves HBM->VMEM DMA traffic too

    itemsize_out = jnp.dtype(out_dtype).itemsize

    # ---- kernel 1: fused QKV projection ------------------------------------
    proj_vmem = (2 * tq * C * 2                 # x tile (double-buffered, bf16)
                 + 3 * C * C * 2                # fused weight (single-buffered)
                 + 3 * 2 * H * tq * Hs * 2      # q/k/v output tiles (2-buffered)
                 + 3 * tq * C * 4)              # f32 matmul intermediate
    q, k, v = pl.pallas_call(
        qkv_proj_kernel,
        out_shape=(jax.ShapeDtypeStruct((B, H, T, Hs), jnp.bfloat16),
                   jax.ShapeDtypeStruct((B, H, T, Hs), jnp.bfloat16),
                   jax.ShapeDtypeStruct((B, H, T, Hs), jnp.bfloat16)),
        grid_spec=pltpu.PrefetchScalarGridSpec(
            num_scalar_prefetch=0,
            grid=(B, T // tq),
            in_specs=[
                pl.BlockSpec((1, tq, C), lambda b, i: (b, i, 0)),
                pl.BlockSpec((C, 3 * C), lambda b, i: (0, 0),
                             pipeline_mode=pl.Buffered(1)),        # never re-fetched
            ],
            out_specs=[
                pl.BlockSpec((1, H, tq, Hs), lambda b, i: (b, 0, i, 0)),
                pl.BlockSpec((1, H, tq, Hs), lambda b, i: (b, 0, i, 0)),
                pl.BlockSpec((1, H, tq, Hs), lambda b, i: (b, 0, i, 0)),
            ],
        ),
        compiler_params=pltpu.CompilerParams(
            dimension_semantics=("parallel", "parallel"),
            vmem_limit_bytes=_vmem_limit(proj_vmem),
        ),
    )(x_bf, wqkv_t)

    # ---- kernel 2: flash attention + output projection ---------------------
    def kv_index_map(b, qi, ki):
        # Clamp to the last causally-needed kv block for this q tile so the
        # skipped steps re-reference the previous block and the pipeline
        # elides the HBM fetch (their compute is skipped by pl.when).
        last_needed = (qi * tq + tq - 1) // tk
        return (b, 0, jnp.minimum(ki, last_needed), 0)

    flash_vmem = (2 * H * tq * Hs * 2               # q tiles (double-buffered)
                  + 2 * 2 * H * tk * Hs * 2         # k + v tiles
                  + C * C * 2 + C * 4               # Wproj^T + bias (1-buffered)
                  + 2 * tq * C * itemsize_out       # output tiles
                  + 2 * H * tq * 4 + H * tq * Hs * 4   # m / l / acc scratch
                  + 2 * H * tq * tk * 4)            # s / p intermediates
    out = pl.pallas_call(
        flash_attn_kernel,
        out_shape=jax.ShapeDtypeStruct((B, T, C), out_dtype),
        grid_spec=pltpu.PrefetchScalarGridSpec(
            num_scalar_prefetch=0,
            grid=(B, T // tq, T // tk),
            in_specs=[
                pl.BlockSpec((1, H, tq, Hs), lambda b, qi, ki: (b, 0, qi, 0)),
                pl.BlockSpec((1, H, tk, Hs), kv_index_map),
                pl.BlockSpec((1, H, tk, Hs), kv_index_map),
                pl.BlockSpec((C, C), lambda b, qi, ki: (0, 0),
                             pipeline_mode=pl.Buffered(1)),
                pl.BlockSpec((1, C), lambda b, qi, ki: (0, 0),
                             pipeline_mode=pl.Buffered(1)),
            ],
            out_specs=pl.BlockSpec((1, tq, C), lambda b, qi, ki: (b, qi, 0)),
            scratch_shapes=[
                pltpu.VMEM((H, tq, 1), jnp.float32),    # running max m
                pltpu.VMEM((H, tq, 1), jnp.float32),    # running denom l
                pltpu.VMEM((H, tq, Hs), jnp.float32),   # output accumulator
            ],
        ),
        compiler_params=pltpu.CompilerParams(
            # v7x megacore: B * (T // tq) grid points shard across the 2 TCs.
            dimension_semantics=("parallel", "parallel", "arbitrary"),
            vmem_limit_bytes=_vmem_limit(flash_vmem),
        ),
    )(q, k, v, wp_t, bp)
    return out


# ---------------------------------------------------------------------------
# Pure-JAX reference and self-test
# ---------------------------------------------------------------------------
def mha_reference(x, wq, wk, wv, w_proj, b_proj):
    """Pure-JAX f32 reference mirroring the PyTorch forward (eval mode)."""
    B, T, C = x.shape
    H = wq.shape[0]
    causal = jnp.tril(jnp.ones((T, T), dtype=bool))
    outs = []
    for h in range(H):
        q = x @ wq[h].T
        k = x @ wk[h].T
        v = x @ wv[h].T
        wei = (q @ jnp.swapaxes(k, -2, -1)) / math.sqrt(C)
        wei = jnp.where(causal[None], wei, -jnp.inf)
        wei = jax.nn.softmax(wei, axis=-1)
        outs.append(wei @ v)
    cat = jnp.concatenate(outs, axis=-1)
    return cat @ w_proj.T + b_proj


if __name__ == "__main__":
    # small shapes consistent with the module
    B, T = 2, 8
    n_emb, n_head = 32, 4
    head_size = n_emb // n_head

    key = jax.random.PRNGKey(0)
    kx, kq, kk, kv, kp, kb = jax.random.split(key, 6)

    x = jax.random.normal(kx, (B, T, n_emb), dtype=jnp.float32)
    # per-head Linear(n_emb, head_size, bias=False) weights, PyTorch (out,in) layout
    wq = 0.1 * jax.random.normal(kq, (n_head, head_size, n_emb), dtype=jnp.float32)
    wk = 0.1 * jax.random.normal(kk, (n_head, head_size, n_emb), dtype=jnp.float32)
    wv = 0.1 * jax.random.normal(kv, (n_head, head_size, n_emb), dtype=jnp.float32)
    # proj = Linear(n_emb, n_emb) weight/bias
    w_proj = 0.1 * jax.random.normal(kp, (n_emb, n_emb), dtype=jnp.float32)
    b_proj = 0.1 * jax.random.normal(kb, (n_emb,), dtype=jnp.float32)

    out = multi_head_attention(x, wq, wk, wv, w_proj, b_proj)
    out = jax.block_until_ready(out)

    ref = mha_reference(x, wq, wk, wv, w_proj, b_proj)
    assert out.shape == (B, T, n_emb)
    # bf16 MXU matmuls with f32 accumulation -> slightly looser tolerance
    assert jnp.allclose(out, ref, atol=2e-2, rtol=2e-2), "mismatch vs reference"

    print("KERNEL_OK")
</pallas_src>

<mosaic_0001>
module attributes {stable_mosaic.version = 11 : i64} {
  func.func @qkv_proj_kernel(%arg0: i32, %arg1: i32, %arg2: memref<1x8x32xbf16, #tpu.memory_space<vmem>>, %arg3: memref<32x96xbf16, #tpu.memory_space<vmem>>, %arg4: memref<1x4x8x8xbf16, #tpu.memory_space<vmem>>, %arg5: memref<1x4x8x8xbf16, #tpu.memory_space<vmem>>, %arg6: memref<1x4x8x8xbf16, #tpu.memory_space<vmem>>) attributes {dimension_semantics = [#tpu.dimension_semantics<parallel>, #tpu.dimension_semantics<parallel>], iteration_bounds = array<i64: 2, 1>, scalar_prefetch = 0 : i64, scratch_operands = 0 : i64, tpu.core_type = #tpu.core_type<tc>, window_params = [{transform_indices = @transform_0, window_bounds = array<i64: 1, 8, 32>}, {pipeline_mode = #tpu.pipeline_mode<synchronous>, transform_indices = @transform_1, window_bounds = array<i64: 32, 96>}, {transform_indices = @transform_2, window_bounds = array<i64: 1, 4, 8, 8>}, {transform_indices = @transform_3, window_bounds = array<i64: 1, 4, 8, 8>}, {transform_indices = @transform_4, window_bounds = array<i64: 1, 4, 8, 8>}]} {
    %c0 = arith.constant 0 : index
    %c0_0 = arith.constant 0 : index
    %c0_1 = arith.constant 0 : index
    %0 = vector.load %arg2[%c0, %c0_0, %c0_1] : memref<1x8x32xbf16, #tpu.memory_space<vmem>>, vector<1x8x32xbf16>
    %1 = vector.shape_cast %0 : vector<1x8x32xbf16> to vector<8x32xbf16>
    %c0_2 = arith.constant 0 : index
    %c0_3 = arith.constant 0 : index
    %2 = vector.load %arg3[%c0_2, %c0_3] : memref<32x96xbf16, #tpu.memory_space<vmem>>, vector<32x96xbf16>
    %cst = arith.constant dense<0.000000e+00> : vector<8x96xf32>
    %3 = tpu.matmul %1, %2, %cst {dimension_numbers = #tpu.dot_dimension_numbers<[1], [0], [0], [1], [0, 0, 1, 1], [], []>} : vector<8x32xbf16>, vector<32x96xbf16>, vector<8x96xf32> -> vector<8x96xf32>
    %4 = vector.extract_strided_slice %3 {offsets = [0, 0], sizes = [8, 32], strides = [1, 1]} : vector<8x96xf32> to vector<8x32xf32>
    %cst_4 = arith.constant 0.176776692 : f32
    %5 = vector.broadcast %cst_4 : f32 to vector<8x32xf32>
    %6 = arith.mulf %4, %5 : vector<8x32xf32>
    %7 = vector.extract_strided_slice %3 {offsets = [0, 32], sizes = [8, 32], strides = [1, 1]} : vector<8x96xf32> to vector<8x32xf32>
    %8 = vector.extract_strided_slice %3 {offsets = [0, 64], sizes = [8, 32], strides = [1, 1]} : vector<8x96xf32> to vector<8x32xf32>
    %9 = vector.shape_cast %6 : vector<8x32xf32> to vector<8x4x8xf32>
    %10 = tpu.transpose %9, [1, 0, 2] : vector<8x4x8xf32> -> vector<4x8x8xf32>
    %11 = arith.truncf %10 : vector<4x8x8xf32> to vector<4x8x8xbf16>
    %c0_5 = arith.constant 0 : index
    %c0_6 = arith.constant 0 : index
    %c0_7 = arith.constant 0 : index
    %c0_8 = arith.constant 0 : index
    %12 = vector.load %arg4[%c0_5, %c0_6, %c0_7, %c0_8] : memref<1x4x8x8xbf16, #tpu.memory_space<vmem>>, vector<1x4x8x8xbf16>
    %13 = vector.shape_cast %12 : vector<1x4x8x8xbf16> to vector<4x8x8xbf16>
    %14 = vector.shape_cast %11 : vector<4x8x8xbf16> to vector<1x4x8x8xbf16>
    tpu.vector_store %arg4[%c0_5, %c0_6, %c0_7, %c0_8], %14 {strides = array<i32>} : memref<1x4x8x8xbf16, #tpu.memory_space<vmem>>, vector<1x4x8x8xbf16>,
    %15 = vector.shape_cast %7 : vector<8x32xf32> to vector<8x4x8xf32>
    %16 = tpu.transpose %15, [1, 0, 2] : vector<8x4x8xf32> -> vector<4x8x8xf32>
    %17 = arith.truncf %16 : vector<4x8x8xf32> to vector<4x8x8xbf16>
    %c0_9 = arith.constant 0 : index
    %c0_10 = arith.constant 0 : index
    %c0_11 = arith.constant 0 : index
    %c0_12 = arith.constant 0 : index
    %18 = vector.load %arg5[%c0_9, %c0_10, %c0_11, %c0_12] : memref<1x4x8x8xbf16, #tpu.memory_space<vmem>>, vector<1x4x8x8xbf16>
    %19 = vector.shape_cast %18 : vector<1x4x8x8xbf16> to vector<4x8x8xbf16>
    %20 = vector.shape_cast %17 : vector<4x8x8xbf16> to vector<1x4x8x8xbf16>
    tpu.vector_store %arg5[%c0_9, %c0_10, %c0_11, %c0_12], %20 {strides = array<i32>} : memref<1x4x8x8xbf16, #tpu.memory_space<vmem>>, vector<1x4x8x8xbf16>,
    %21 = vector.shape_cast %8 : vector<8x32xf32> to vector<8x4x8xf32>
    %22 = tpu.transpose %21, [1, 0, 2] : vector<8x4x8xf32> -> vector<4x8x8xf32>
    %23 = arith.truncf %22 : vector<4x8x8xf32> to vector<4x8x8xbf16>
    %c0_13 = arith.constant 0 : index
    %c0_14 = arith.constant 0 : index
    %c0_15 = arith.constant 0 : index
    %c0_16 = arith.constant 0 : index
    %24 = vector.load %arg6[%c0_13, %c0_14, %c0_15, %c0_16] : memref<1x4x8x8xbf16, #tpu.memory_space<vmem>>, vector<1x4x8x8xbf16>
    %25 = vector.shape_cast %24 : vector<1x4x8x8xbf16> to vector<4x8x8xbf16>
    %26 = vector.shape_cast %23 : vector<4x8x8xbf16> to vector<1x4x8x8xbf16>
    tpu.vector_store %arg6[%c0_13, %c0_14, %c0_15, %c0_16], %26 {strides = array<i32>} : memref<1x4x8x8xbf16, #tpu.memory_space<vmem>>, vector<1x4x8x8xbf16>,
    return
  }
  func.func @transform_0(%arg0: i32, %arg1: i32) -> (i32, i32, i32) {
    %c0_i32 = arith.constant 0 : i32
    %c0_i32_0 = arith.constant 0 : i32
    return %arg0, %arg1, %c0_i32 : i32, i32, i32
  }
  func.func @transform_1(%arg0: i32, %arg1: i32) -> (i32, i32) {
    %c0_i32 = arith.constant 0 : i32
    %c0_i32_0 = arith.constant 0 : i32
    %c0_i32_1 = arith.constant 0 : i32
    return %c0_i32, %c0_i32_0 : i32, i32
  }
  func.func @transform_2(%arg0: i32, %arg1: i32) -> (i32, i32, i32, i32) {
    %c0_i32 = arith.constant 0 : i32
    %c0_i32_0 = arith.constant 0 : i32
    %c0_i32_1 = arith.constant 0 : i32
    return %arg0, %c0_i32, %arg1, %c0_i32_0 : i32, i32, i32, i32
  }
  func.func @transform_3(%arg0: i32, %arg1: i32) -> (i32, i32, i32, i32) {
    %c0_i32 = arith.constant 0 : i32
    %c0_i32_0 = arith.constant 0 : i32
    %c0_i32_1 = arith.constant 0 : i32
    return %arg0, %c0_i32, %arg1, %c0_i32_0 : i32, i32, i32, i32
  }
  func.func @transform_4(%arg0: i32, %arg1: i32) -> (i32, i32, i32, i32) {
    %c0_i32 = arith.constant 0 : i32
    %c0_i32_0 = arith.constant 0 : i32
    %c0_i32_1 = arith.constant 0 : i32
    return %arg0, %c0_i32, %arg1, %c0_i32_0 : i32, i32, i32, i32
  }
}

</mosaic_0001>

<bundles_post_ra>
// kernel: tpu_custom_call.1
= control target key start
LH: loop header
LB: loop body
LE: loop exit
PB: predicated region body
PF: predicated region fallthrough
CT: control target
= control target key end

     0   :  { %s1742_s0 = inlined_call_operand.hbm [shape: bf16[2,8,32], index: 0, kind: input, shape index: {}]   ;;  %s1743_s1 = inlined_call_operand.hbm [shape: bf16[32,96], index: 1, kind: input, shape index: {}]   ;;  %s1744_s2 = inlined_call_operand.hbm [shape: bf16[2,4,8,8], index: 2, kind: output, shape index: {0}]   ;;  %s1745_s3 = inlined_call_operand.hbm [shape: bf16[2,4,8,8], index: 3, kind: output, shape index: {1}]   ;;  %s1746_s4 = inlined_call_operand.hbm [shape: bf16[2,4,8,8], index: 4, kind: output, shape index: {2}]  }
   0x1   :  { %1749 = sst [smem:[#allocation15_spill]] %s1743_s1 }
   0x2   :  { %10 = vsyncpa [#allocation3], 0 }
   0x3   :  { %12 = vsyncpa [#allocation3 + $0x1], 0 }
   0x4   :  { %13 = vsyncpa [#allocation6], 0 }
   0x5   :  { %14 = vsyncpa [#allocation4], 0 }
   0x6   :  { %16 = vsyncpa [#allocation4 + $0x1], 0 }
   0x7   :  { %17 = vsyncpa [#allocation9], 0 }
   0x8   :  { %19 = vsyncpa [#allocation9 + $0x1], 0  ;;  %s1404_s15 = smov 0   ;;  %s1406_s16 = smov 0  }
   0x9   :  { %s1408_s17 = smov 0   ;;  %s1410_s18 = smov 0  }
   0xa   :  { %s1412_s19 = smov 0   ;;  %s1414_s20 = smov 0  }
   0xb LB: > { %s1435_s21 = sadd.s32 4294967295, %s1360_s20   ;;  %s1747_s22 = sadd.s32 4294967294, %s1360_s20   ;;  %s1360_s20 = sphi %s1414_s20, %s25_s20   ;;  %s1356_s19 = sphi %s1412_s19, %s1768_s19   ;;  %s1352_s18 = sphi %s1410_s18, %s1767_s18   ;;  %s1348_s17 = sphi %s1408_s17, %s1766_s17   ;;  %s1344_s16 = sphi %s1406_s16, %s1765_s16   ;;  %s1340_s15 = sphi %s1404_s15, %s1764_s15  }
   0xc   : > { %p59_p0 = scmp.ne.s32.totalorder %s1344_s16, %s1340_s15  ;;  %p1748_p1 = scmp.eq.s32.totalorder %s1435_s21, 0 }
   0xd   : > { %p112_p3 = scmp.eq.s32.totalorder %s1747_s22, 1  ;;  %p1024_p5 = scmp.ge.s32.totalorder %s1360_s20, 1 }
   0xe   : > { %p1446_p4 = por %p1748_p1, %p59_p0  ;;  %p175_p7 = scmp.lt.s32.totalorder %s1360_s20, 3 }
   0xf   : > { %p1451_p6 = por %p112_p3, %p59_p0  ;;  %s1362_s26 = smov [#allocation5]  }
  0x10   : > { %p1456_p8 = pnand %p1024_p5, %p175_p7  ;;  %s187_s27 = sshll.u32 %s1362_s26, 4  ;;  %s188_s27 = int_to_ptr.vmem [resolvable:$true] %s187_s27 }
  0x11   : > { %s1751_s24 = scalar_select %p1451_p6, 1, 0 }
  0x12   : > { %p1081_p9 = pneg %p1456_p8  ;;  %s37_s29 = sadd.s32 1, %s1356_s19 }
  0x13   : > { %s1177_s30 = scalar_lea.vmem %s188_s27, 256  ;;  %p1185_p5 = scmp.lt.s32.totalorder %s188_s27, %s188_s27 }
  0x14   : > { %p1465_p11 = pnand %p1081_p9, %p1748_p1  ;;  %p1178_p13 = scmp.ne.s32.totalorder %s188_s27, %s1177_s30 }
  0x15   : > { %p1186_p7 = scmp.lt.s32.totalorder %s1177_s30, %s1177_s30 }
  0x16   : > { %p1168_p12 = pneg %p1465_p11 }
  0x17   : > { %p1187_p2 = por %p1186_p7, %p1185_p5 }
  0x18   : > { %p1180_p0 = pnand %p1178_p13, %p1168_p12 }
  0x1a   : > { %p1181_p3 = pneg %p1180_p0 }
  0x1c   : > { %p1188_p6 = pnand %p1187_p2, %p1181_p3 }
  0x1e   : > { %1191 = shalt.err (!%p1188_p6)
}
  0x1f   : > { %s1363_s5 = smov 64   ;;  %s1364_s6 = smov 4  }
  0x20   : > { %s1754_s1 = sld [smem:[#allocation15_spill]]  ;;  %p39_p2 = scmp.ge.s32.totalorder %s37_s29, 2 }
  0x21   : > { %s46_s9 = sadd.s32 1, %s1348_s17  ;;  %p53_p6 = scmp.ne.s32.totalorder %s1348_s17, %s1344_s16 }
  0x22   : > { %p54_p9 = scmp.eq.s32.totalorder %s1360_s20, 0  ;;  %s1770_s29 = smov (%p39_p2, %s37_s29), 0 }
  0x23   : > { %p1756_p13 = scmp.eq.s32.totalorder %s1435_s21, 1  ;;  %s41_s12 = ssub.s32 %s1356_s19, %s1770_s29 }
  0x24   : > { %p1483_p12 = por %p54_p9, %p53_p6  ;;  %p1100_p3 = scmp.lt.s32.totalorder %s1360_s20, 2 }
  0x25   : > { %p1489_p0 = por %p1756_p13, %p53_p6  ;;  %s201_s13 = sand.u32 1, %s1348_s17  }
  0x26   : > { %1084 = dma.hbm_to_vmem [thread:$0]  (!%p1465_p11), %s1754_s1, 256, %s188_s27, [#allocation6], %s1363_s5, %s1363_s5, %s1364_s6  }
  0x27   : > { %p44_p11 = scmp.eq.s32.totalorder %s41_s12, 0  ;;  %s1027_s14 = sshll.u32 %s201_s13, 2 }
  0x28   : > { %s1028_s27 = sshll.u32 %s1356_s19, 6  ;;  %s205_s6 = scalar_lea.vmem [#allocation2], %s1027_s14 }
  0x29   : > { %s1498_s26 = scalar_select %p44_p11, %s1348_s17, %s46_s9  }
  0x2a   : > { %s211_s5 = scalar_lea.hbm %s1742_s0, %s1028_s27  ;;  %s213_s7 = sshll.u32 %s205_s6, 4  ;;  %s214_s7 = int_to_ptr.vmem [resolvable:$true] %s213_s7 }
  0x2b   : > { %p1506_p5 = pnand %p1100_p3, %p1483_p12  ;;  %s202_s22 = scalar_lea.sflag [#allocation3], %s201_s13 }
  0x2c   : > { %s1205_s12 = scalar_lea.vmem %s214_s7, 64  ;;  %s1365_s9 = smov [#allocation2]  }
  0x2d   : > { %p1194_p7 = pneg %p1506_p5  ;;  %p1206_p2 = scmp.ne.s32.totalorder %s214_s7, %s1205_s12 }
  0x2e   : > { %s1210_s1 = sshll.u32 %s1365_s9, 4  ;;  %s1211_s1 = int_to_ptr.vmem [resolvable:$false] %s1210_s1 }
  0x2f   : > { %p1208_p6 = pnand %p1206_p2, %p1194_p7  ;;  %s1212_s27 = scalar_lea.vmem %s1211_s1, 128 }
  0x30   : > { %p1213_p13 = scmp.lt.s32.totalorder %s214_s7, %s1211_s1  ;;  %p1214_p11 = scmp.lt.s32.totalorder %s1212_s27, %s1205_s12 }
  0x31   : > { %p1209_p9 = pneg %p1208_p6 }
  0x32   : > { %p1215_p10 = por %p1214_p11, %p1213_p13 }
  0x34   : > { %p1216_p1 = pnand %p1215_p10, %p1209_p9 }
  0x36   : > { %1219 = shalt.err (!%p1216_p1)
}
  0x37   : > { %1088 = dma.hbm_to_vmem [thread:$0]  (!%p1506_p5), %s211_s5, 64, %s214_s7, %s202_s22  }
  0x38   : > { %222 = sbr.rel (%p1456_p8) target bundleno = 559 (0x22f), region = 28  ;;  %s1517_s10 = sand.u32 (!%p1456_p8), 1, %s1344_s16  }
  0x39   : > { %s1030_s13 = sshll.u32 (!%p1456_p8), %s1517_s10, 2  ;;  %s225_s14 = scalar_lea.sflag (!%p1456_p8), [#allocation3], %s1517_s10 }
  0x3a   : > { %s228_s28 = scalar_lea.vmem (!%p1456_p8), [#allocation2], %s1030_s13 }
  0x3d   : > { %1323 = dma.done.wait (%p1446_p4), %s225_s14, 64  }
  0x3e   : > { %1325 = vsyncadd (%p1446_p4), %s225_s14, 4294967232  ;;  %p1759_p1 = scmp.eq.s32.totalorder %s1435_s21, 0 }
  0x40   : > { %1327 = dma.done.wait (%p1759_p1), [#allocation6], 256   ;;  %p1760_p10 = pmov %p1759_p1 }
  0x41   : > { %v1366_v0 = vmov 0.0   ;;  %vm1367_vm0 = vmmov 0   ;;  %v1164_v1 = vld [vmem:[#allocation5 + $0x8] sm:$0xff]   ;;  %v1165_v2 = vld [vmem:[#allocation5] sm:$0xff]   ;;  %v268_v3 = vld [vmem:[%s228_s28] sm:$0xf]  ;;  %v345_v13 = vlaneseq }
  0x42   : > { %1329 = vsyncadd (%p1760_p10), [#allocation6], 4294967040  ;;  %1061 = vmatprep.subr.bf16.mxu0 %v1366_v0  ;;  %1065 = vmatprep.mubr.msk.bf16.mxu0 %vm1367_vm0, %v1366_v0  ;;  %vm285_vm1 = vcmask 261120   ;;  %s1368_s1 = smov 104   ;;  %s1369_s22 = smov 120   ;;  %vm480_vm2 = vcmask 60416  }
  0x43   : > { %1062 = vmatpush3.bf16.msra.mxu0 %v1164_v1  ;;  %s1370_s23 = smov 96   ;;  %s1371_s25 = smov 112   ;;  %v1373_v11 = vmov 1983009808   ;;  %v1374_v16 = vmov 1934713408  }
  0x44   : > { %1063 = vmatprep.subr.bf16.mxu0 %v1366_v0  ;;  %s1372_s30 = smov 64   ;;  %v343_v12 = vunpack.c.l.s4 %v1373_v11  ;;  %v375_v17 = vunpack.c.l.s4 %v1374_v16  ;;  %v346_v19 = vshrl.u32 %v345_v13, 7  ;;  %s1554_s5 = sshll.u32 %s1517_s10, 4 }
  0x45   : > { %s1561_s6 = sshll.u32 %s1352_s18, 8  ;;  %s252_s7 = scalar_lea.vmem [#allocation7], %s1554_s5 }
  0x46   : > { %v344_v18 = vunpack.c.0.s8 %v343_v12  ;;  %v376_v22 = vunpack.c.0.s8 %v375_v17  ;;  %s829_s8 = sshll.u32 %s252_s7, 4  ;;  %s1568_s27 = scalar_lea.hbm %s1744_s2, %s1561_s6  ;;  %s1570_s8 = int_to_ptr.vmem [resolvable:$true] %s829_s8 }
  0x47   : > { %1064 = vmatpush3.bf16.msra.mxu0 %v1165_v2  ;;  %s805_s18 = scalar_lea.sflag [#allocation4], %s1517_s10  ;;  %s1220_s13 = scalar_lea.vmem %s1570_s8, 256 }
  0x48   : > { %v1536_v23 = vsub.s32 %v344_v18, %v346_v19  ;;  %v1539_v30 = vsub.s32 %v376_v22, %v346_v19  ;;  %p1221_p4 = scmp.ne.s32.totalorder %s1570_s8, %s1220_s13  ;;  %s1375_s14 = smov [#allocation7]  }
  0x49   : > { %s1224_s28 = sshll.u32 %s1375_s14, 4  ;;  %s1225_s28 = int_to_ptr.vmem [resolvable:$false] %s1224_s28 }
  0x4a   : > { %1066 = vmatmul.mubr.msk.bf16.vlgmr.msra.gmra.mxu0 %vm285_vm1, %v268_v3  ;;  %p1222_p8 = pnand %p1221_p4, %p1489_p0  ;;  %p1227_p3 = scmp.lt.s32.totalorder %s1570_s8, %s1225_s28 }
  0x4c   : > { %p1223_p12 = pneg %p1222_p8 }
 0x10a   : > { %v323_v4 = vpop.f32.mrf.mxu0 }
 0x10b   : > { %490 = vrot.lane.b32.xlu1 %v323_v4, %s1368_s1  ;;  %486 = vrot.lane.b32.xlu0 %v323_v4, %s1369_s22  ;;  %v329_v8 = vmul.f32 0.17677669, %v323_v4 }
 0x10c   : > { %v1067_v5 = vpop.f32.mrf.mxu0 }
 0x10e   : > { %v326_v6 = vpop.f32.mrf.mxu0 }
 0x10f   : > { %492 = vrot.lane.b32.xlu1 %v323_v4, %s1370_s23  ;;  %488 = vrot.lane.b32.xlu0 %v323_v4, %s1371_s25 }
 0x110   : > { %v1068_v7 = vpop.f32.mrf.mxu0 }
 0x113   : > { %648 = vrot.lane.b32.xlu0 %v323_v4, %s1372_s30  ;;  %331 = vrot.lane.b32.xlu1 %v329_v8, %s1369_s22 }
 0x117   : > { %334 = vrot.lane.b32.xlu0 %v329_v8, %s1371_s25  ;;  %337 = vrot.lane.b32.xlu1 %v329_v8, %s1368_s1  ;;  %s1226_s1 = scalar_lea.vmem %s1225_s28, 512 }
 0x118   : > { %p1228_p5 = scmp.lt.s32.totalorder %s1226_s1, %s1220_s13 }
 0x11a   : > { %p1229_p7 = por %p1228_p5, %p1227_p3 }
 0x11c   : > { %p1230_p2 = pnand %p1229_p7, %p1223_p12 }
 0x17d   : > { %v491_v9 = vpop.permute.xlu1 %490  ;;  %v487_v10 = vpop.permute.xlu0 %486 }
 0x17e   : > { %494 = vrot.lane.b32.xlu0 %v487_v10, %s1370_s23 }
 0x181   : > { %v1530_v14 = vpop.permute.xlu1 %492  ;;  %v489_v15 = vpop.permute.xlu0 %488 }
 0x182   : > { %498 = vrot.lane.b32.xlu0 %v491_v9, %s1370_s23  ;;  %496 = vrot.lane.b32.xlu1 %v489_v15, %s1370_s23 }
 0x185   : > { %v1532_v20 = vpop.permute.xlu0 %648  ;;  %v332_v21 = vpop.permute.xlu1 %331 }
 0x186   : > { %652 = vrot.lane.b32.xlu0 %v489_v15, %s1372_s30  ;;  %650 = vrot.lane.b32.xlu1 %v487_v10, %s1372_s30 }
 0x189   : > { %v335_v24 = vpop.permute.xlu0 %334  ;;  %v338_v25 = vpop.permute.xlu1 %337 }
 0x18a   : > { %v340_v26 = vcombine.low %v329_v8, %v335_v24  ;;  %v341_v27 = vcombine.high %v329_v8, %v335_v24  ;;  %v356_v28 = vcombine.low %v332_v21, %v338_v25  ;;  %v357_v29 = vcombine.high %v332_v21, %v338_v25  ;;  %654 = vrot.lane.b32.xlu1 %v491_v9, %s1372_s30 }
 0x18c   : > { %v348_v31 = vrot.slane %v340_v26, %v1536_v23  ;;  %v355_v32 = vrot.slane %v341_v27, %v1536_v23  ;;  %v364_v33 = vrot.slane %v356_v28, %v1536_v23  ;;  %v371_v34 = vrot.slane %v357_v29, %v1536_v23 }
 0x18e   : > { %v372_v35 = vcombine.low %v348_v31, %v364_v33  ;;  %v373_v36 = vcombine.high %v348_v31, %v364_v33  ;;  %v388_v37 = vcombine.low %v355_v32, %v371_v34  ;;  %v389_v38 = vcombine.high %v355_v32, %v371_v34 }
 0x190   : > { %v380_v39 = vrot.slane %v372_v35, %v1539_v30  ;;  %v387_v40 = vrot.slane %v373_v36, %v1539_v30  ;;  %v396_v41 = vrot.slane %v388_v37, %v1539_v30  ;;  %v403_v42 = vrot.slane %v389_v38, %v1539_v30 }
 0x192   : > { %v408_v43 = vcombine.low %v380_v39, %v387_v40  ;;  %v1038_v44 = vcombine.high %v380_v39, %v387_v40  ;;  %v424_v45 = vcombine.low %v396_v41, %v403_v42  ;;  %v1039_v46 = vcombine.high %v396_v41, %v403_v42 }
 0x194   : > { %v415_v47 = vrot.slane %v408_v43, %v1536_v23  ;;  %v423_v48 = vrot.slane %v1038_v44, %v1536_v23  ;;  %v431_v49 = vrot.slane %v424_v45, %v1536_v23  ;;  %v439_v50 = vrot.slane %v1039_v46, %v1536_v23 }
 0x196   : > { %v440_v51 = vcombine.low %v415_v47, %v423_v48  ;;  %v441_v52 = vcombine.high %v415_v47, %v423_v48  ;;  %v456_v53 = vcombine.low %v431_v49, %v439_v50  ;;  %v457_v54 = vcombine.high %v431_v49, %v439_v50 }
 0x198   : > { %v448_v55 = vrot.slane %v440_v51, %v1539_v30  ;;  %v455_v56 = vrot.slane %v441_v52, %v1539_v30  ;;  %v464_v57 = vrot.slane %v456_v53, %v1539_v30  ;;  %v471_v58 = vrot.slane %v457_v54, %v1539_v30 }
 0x19a   : > { %v472_v59 = vcombine.low %v448_v55, %v464_v57  ;;  %v473_v60 = vcombine.high %v448_v55, %v464_v57  ;;  %v474_v61 = vcombine.low %v455_v56, %v471_v58  ;;  %v475_v62 = vcombine.high %v455_v56, %v471_v58 }
 0x19c   : > { %v476_v63 = vpack.c.bf16 %v472_v59, %v472_v59  ;;  %v477_v0 = vpack.c.bf16 %v473_v60, %v473_v60  ;;  %v478_v1 = vpack.c.bf16 %v474_v61, %v474_v61  ;;  %v479_v2 = vpack.c.bf16 %v475_v62, %v475_v62 }
 0x19e   : > { %481 = vst.msk [vmem:[%s252_s7] sm:$0xf] %vm480_vm2, %v476_v63  ;;  %482 = vst.msk [vmem:[%s252_s7 + $0x4] sm:$0xf] %vm480_vm2, %v477_v0 }
 0x19f   : > { %483 = vst.msk [vmem:[%s252_s7 + $0x8] sm:$0xf] %vm480_vm2, %v478_v1  ;;  %484 = vst.msk [vmem:[%s252_s7 + $0xc] sm:$0xf] %vm480_vm2, %v479_v2 }
 0x1a0   : > { %1233 = shalt.err (!%p1230_p2)
}
 0x1a1   : > { %s1234_s22 = scalar_lea.hbm %s1568_s27, 256  ;;  %s1238_s7 = scalar_lea.hbm %s1744_s2, 512 }
 0x1a2   : > { %p1235_p6 = scmp.ne.s32.totalorder %s1568_s27, %s1234_s22  ;;  %p1239_p11 = scmp.lt.s32.totalorder %s1568_s27, %s1744_s2 }
 0x1a3   : > { %p1240_p1 = scmp.lt.s32.totalorder %s1238_s7, %s1234_s22 }
 0x1a4   : > { %p1236_p9 = pnand %p1235_p6, %p1489_p0 }
 0x1a5   : > { %p1241_p10 = por %p1240_p1, %p1239_p11 }
 0x1a6   : > { %p1237_p13 = pneg %p1236_p9 }
 0x1a8   : > { %p1242_p4 = pnand %p1241_p10, %p1237_p13 }
 0x1aa   : > { %1245 = shalt.err (!%p1242_p4)
}
 0x1ab   : > { %s1376_s13 = smov 4   ;;  %s809_s10 = sand.u32 1, %s1435_s21  }
 0x1ac   : > { %1075 = dma.vmem_to_hbm [thread:$0]  (%p1489_p0), %s1570_s8, 256, %s1568_s27, %s805_s18, %s1372_s30, %s1372_s30, %s1376_s13  }
 0x1ad   : > { %s259_s8 = scalar_lea.vmem [#allocation8], %s1554_s5  ;;  %s1636_s28 = scalar_lea.hbm %s1745_s3, %s1561_s6 }
 0x1ae   : > { %s846_s27 = sshll.u32 %s259_s8, 4  ;;  %s1650_s1 = scalar_lea.sflag [#allocation9], %s809_s10  ;;  %s1638_s27 = int_to_ptr.vmem [resolvable:$true] %s846_s27 }
 0x1af   : > { %s1246_s22 = scalar_lea.vmem %s1638_s27, 256  ;;  %s1377_s23 = smov [#allocation8]  }
 0x1b0   : > { %p1247_p8 = scmp.ne.s32.totalorder %s1638_s27, %s1246_s22  ;;  %s1250_s25 = sshll.u32 %s1377_s23, 4  ;;  %s1251_s25 = int_to_ptr.vmem [resolvable:$false] %s1250_s25 }
 0x1b1   : > { %s1252_s7 = scalar_lea.vmem %s1251_s25, 512  ;;  %p1253_p5 = scmp.lt.s32.totalorder %s1638_s27, %s1251_s25 }
 0x1b2   : > { %p1248_p12 = pnand %p1247_p8, %p1489_p0  ;;  %p1254_p7 = scmp.lt.s32.totalorder %s1252_s7, %s1246_s22 }
 0x1b4   : > { %p1249_p3 = pneg %p1248_p12  ;;  %p1255_p2 = por %p1254_p7, %p1253_p5 }
 0x1b6   : > { %p1256_p6 = pnand %p1255_p2, %p1249_p3 }
 0x1f0   : > { %v495_v3 = vpop.permute.xlu0 %494 }
 0x1f4   : > { %v499_v4 = vpop.permute.xlu0 %498  ;;  %v497_v5 = vpop.permute.xlu1 %496 }
 0x1f5   : > { %v520_v6 = vcombine.low %v495_v3, %v499_v4  ;;  %v521_v7 = vcombine.high %v495_v3, %v499_v4  ;;  %v504_v8 = vcombine.low %v1530_v14, %v497_v5  ;;  %v505_v9 = vcombine.high %v1530_v14, %v497_v5 }
 0x1f7   : > { %v528_v10 = vrot.slane %v520_v6, %v1536_v23  ;;  %v535_v11 = vrot.slane %v521_v7, %v1536_v23  ;;  %v512_v12 = vrot.slane %v504_v8, %v1536_v23  ;;  %v519_v13 = vrot.slane %v505_v9, %v1536_v23 }
 0x1f8   : > { %v651_v15 = vpop.permute.xlu1 %650  ;;  %v653_v21 = vpop.permute.xlu0 %652 }
 0x1f9   : > { %v536_v16 = vcombine.low %v512_v12, %v528_v10  ;;  %v537_v17 = vcombine.high %v512_v12, %v528_v10  ;;  %v552_v18 = vcombine.low %v519_v13, %v535_v11  ;;  %v553_v19 = vcombine.high %v519_v13, %v535_v11 }
 0x1fa   : > { %v660_v26 = vcombine.low %v1532_v20, %v653_v21  ;;  %v661_v27 = vcombine.high %v1532_v20, %v653_v21 }
 0x1fb   : > { %v544_v22 = vrot.slane %v536_v16, %v1539_v30  ;;  %v551_v24 = vrot.slane %v537_v17, %v1539_v30  ;;  %v560_v14 = vrot.slane %v552_v18, %v1539_v30  ;;  %v567_v25 = vrot.slane %v553_v19, %v1539_v30 }
 0x1fc   : > { %v655_v28 = vpop.permute.xlu1 %654  ;;  %v668_v40 = vrot.slane %v660_v26, %v1536_v23  ;;  %v675_v20 = vrot.slane %v661_v27, %v1536_v23 }
 0x1fd   : > { %v572_v29 = vcombine.low %v544_v22, %v551_v24  ;;  %v1040_v31 = vcombine.high %v544_v22, %v551_v24  ;;  %v588_v32 = vcombine.low %v560_v14, %v567_v25  ;;  %v1041_v33 = vcombine.high %v560_v14, %v567_v25 }
 0x1fe   : > { %v676_v34 = vcombine.low %v651_v15, %v655_v28  ;;  %v677_v35 = vcombine.high %v651_v15, %v655_v28 }
 0x1ff   : > { %v579_v36 = vrot.slane %v572_v29, %v1536_v23  ;;  %v587_v37 = vrot.slane %v1040_v31, %v1536_v23  ;;  %v595_v38 = vrot.slane %v588_v32, %v1536_v23  ;;  %v603_v39 = vrot.slane %v1041_v33, %v1536_v23 }
 0x200   : > { %v684_v41 = vrot.slane %v676_v34, %v1536_v23  ;;  %v691_v42 = vrot.slane %v677_v35, %v1536_v23 }
 0x201   : > { %v604_v43 = vcombine.low %v579_v36, %v587_v37  ;;  %v605_v44 = vcombine.high %v579_v36, %v587_v37  ;;  %v620_v45 = vcombine.low %v595_v38, %v603_v39  ;;  %v621_v46 = vcombine.high %v595_v38, %v603_v39 }
 0x202   : > { %v692_v47 = vcombine.low %v668_v40, %v684_v41  ;;  %v693_v48 = vcombine.high %v668_v40, %v684_v41  ;;  %v708_v49 = vcombine.low %v675_v20, %v691_v42  ;;  %v709_v50 = vcombine.high %v675_v20, %v691_v42 }
 0x203   : > { %v612_v51 = vrot.slane %v604_v43, %v1539_v30  ;;  %v619_v52 = vrot.slane %v605_v44, %v1539_v30  ;;  %v628_v53 = vrot.slane %v620_v45, %v1539_v30  ;;  %v635_v54 = vrot.slane %v621_v46, %v1539_v30 }
 0x204   : > { %v700_v55 = vrot.slane %v692_v47, %v1539_v30  ;;  %v707_v56 = vrot.slane %v693_v48, %v1539_v30  ;;  %v716_v57 = vrot.slane %v708_v49, %v1539_v30  ;;  %v723_v58 = vrot.slane %v709_v50, %v1539_v30 }
 0x205   : > { %v636_v59 = vcombine.low %v612_v51, %v628_v53  ;;  %v637_v60 = vcombine.high %v612_v51, %v628_v53  ;;  %v638_v61 = vcombine.low %v619_v52, %v635_v54  ;;  %v639_v62 = vcombine.high %v619_v52, %v635_v54 }
 0x206   : > { %v728_v63 = vcombine.low %v700_v55, %v707_v56  ;;  %v1042_v0 = vcombine.high %v700_v55, %v707_v56  ;;  %v744_v1 = vcombine.low %v716_v57, %v723_v58  ;;  %v1043_v2 = vcombine.high %v716_v57, %v723_v58 }
 0x207   : > { %v640_v3 = vpack.c.bf16 %v636_v59, %v636_v59  ;;  %v641_v4 = vpack.c.bf16 %v637_v60, %v637_v60  ;;  %v642_v5 = vpack.c.bf16 %v638_v61, %v638_v61  ;;  %v643_v6 = vpack.c.bf16 %v639_v62, %v639_v62 }
 0x208   : > { %v735_v7 = vrot.slane %v728_v63, %v1536_v23  ;;  %v743_v8 = vrot.slane %v1042_v0, %v1536_v23  ;;  %v751_v9 = vrot.slane %v744_v1, %v1536_v23  ;;  %v759_v10 = vrot.slane %v1043_v2, %v1536_v23 }
 0x209   : > { %644 = vst.msk [vmem:[%s259_s8] sm:$0xf] %vm480_vm2, %v640_v3  ;;  %645 = vst.msk [vmem:[%s259_s8 + $0x4] sm:$0xf] %vm480_vm2, %v641_v4 }
 0x20a   : > { %646 = vst.msk [vmem:[%s259_s8 + $0x8] sm:$0xf] %vm480_vm2, %v642_v5  ;;  %647 = vst.msk [vmem:[%s259_s8 + $0xc] sm:$0xf] %vm480_vm2, %v643_v6  ;;  %v760_v11 = vcombine.low %v735_v7, %v743_v8  ;;  %v761_v12 = vcombine.high %v735_v7, %v743_v8  ;;  %v776_v13 = vcombine.low %v751_v9, %v759_v10 }
 0x20b   : > { %v777_v15 = vcombine.high %v751_v9, %v759_v10 }
 0x20c   : > { %1259 = shalt.err (!%p1256_p6)
}
 0x20d   : > { %s1260_s21 = scalar_lea.hbm %s1636_s28, 256  ;;  %s1264_s10 = scalar_lea.hbm %s1745_s3, 512 }
 0x20e   : > { %p1261_p9 = scmp.ne.s32.totalorder %s1636_s28, %s1260_s21  ;;  %p1265_p1 = scmp.lt.s32.totalorder %s1636_s28, %s1745_s3 }
 0x20f   : > { %p1266_p10 = scmp.lt.s32.totalorder %s1264_s10, %s1260_s21 }
 0x210   : > { %p1262_p13 = pnand %p1261_p9, %p1489_p0 }
 0x211   : > { %p1267_p4 = por %p1266_p10, %p1265_p1 }
 0x212   : > { %p1263_p11 = pneg %p1262_p13 }
 0x214   : > { %p1268_p8 = pnand %p1267_p4, %p1263_p11 }
 0x216   : > { %1271 = shalt.err (!%p1268_p8)
}
 0x217   : > { %1076 = dma.vmem_to_hbm [thread:$0]  (%p1489_p0), %s1638_s27, 256, %s1636_s28, %s1650_s1, %s1372_s30, %s1372_s30, %s1376_s13   ;;  %v768_v23 = vrot.slane %v760_v11, %v1539_v30  ;;  %v775_v16 = vrot.slane %v761_v12, %v1539_v30  ;;  %v784_v17 = vrot.slane %v776_v13, %v1539_v30  ;;  %v791_v18 = vrot.slane %v777_v15, %v1539_v30 }
 0x218   : > { %s266_s14 = scalar_lea.vmem [#allocation10], %s1554_s5  ;;  %s1685_s23 = scalar_lea.hbm %s1746_s4, %s1561_s6 }
 0x219   : > { %s863_s22 = sshll.u32 %s266_s14, 4  ;;  %v792_v19 = vcombine.low %v768_v23, %v784_v17  ;;  %v793_v21 = vcombine.high %v768_v23, %v784_v17  ;;  %v794_v22 = vcombine.low %v775_v16, %v791_v18  ;;  %v795_v24 = vcombine.high %v775_v16, %v791_v18  ;;  %s1378_s6 = smov [#allocation10]   ;;  %s1687_s22 = int_to_ptr.vmem [resolvable:$true] %s863_s22 }
 0x21a   : > { %s1272_s5 = scalar_lea.vmem %s1687_s22, 256  ;;  %s1276_s25 = sshll.u32 %s1378_s6, 4  ;;  %s1277_s25 = int_to_ptr.vmem [resolvable:$false] %s1276_s25 }
 0x21b   : > { %v796_v14 = vpack.c.bf16 %v792_v19, %v792_v19  ;;  %v797_v25 = vpack.c.bf16 %v793_v21, %v793_v21  ;;  %v798_v26 = vpack.c.bf16 %v794_v22, %v794_v22  ;;  %v799_v27 = vpack.c.bf16 %v795_v24, %v795_v24  ;;  %p1273_p12 = scmp.ne.s32.totalorder %s1687_s22, %s1272_s5  ;;  %s1278_s7 = scalar_lea.vmem %s1277_s25, 512 }
 0x21c   : > { %p1279_p7 = scmp.lt.s32.totalorder %s1687_s22, %s1277_s25  ;;  %p1280_p2 = scmp.lt.s32.totalorder %s1278_s7, %s1272_s5 }
 0x21d   : > { %800 = vst.msk [vmem:[%s266_s14] sm:$0xf] %vm480_vm2, %v796_v14  ;;  %801 = vst.msk [vmem:[%s266_s14 + $0x4] sm:$0xf] %vm480_vm2, %v797_v25  ;;  %p1274_p3 = pnand %p1273_p12, %p1489_p0 }
 0x21e   : > { %802 = vst.msk [vmem:[%s266_s14 + $0x8] sm:$0xf] %vm480_vm2, %v798_v26  ;;  %803 = vst.msk [vmem:[%s266_s14 + $0xc] sm:$0xf] %vm480_vm2, %v799_v27  ;;  %p1281_p6 = por %p1280_p2, %p1279_p7 }
 0x21f   : > { %p1275_p5 = pneg %p1274_p3 }
 0x221   : > { %p1282_p9 = pnand %p1281_p6, %p1275_p5 }
 0x223   : > { %1285 = shalt.err (!%p1282_p9)
}
 0x224   : > { %s1286_s21 = scalar_lea.hbm %s1685_s23, 256  ;;  %s1290_s10 = scalar_lea.hbm %s1746_s4, 512 }
 0x225   : > { %p1287_p13 = scmp.ne.s32.totalorder %s1685_s23, %s1286_s21  ;;  %p1291_p10 = scmp.lt.s32.totalorder %s1685_s23, %s1746_s4 }
 0x226   : > { %p1292_p4 = scmp.lt.s32.totalorder %s1290_s10, %s1286_s21 }
 0x227   : > { %p1288_p11 = pnand %p1287_p13, %p1489_p0 }
 0x228   : > { %p1293_p8 = por %p1292_p4, %p1291_p10 }
 0x229   : > { %p1289_p1 = pneg %p1288_p11 }
 0x22b   : > { %p1294_p12 = pnand %p1293_p8, %p1289_p1 }
 0x22d   : > { %1297 = shalt.err (!%p1294_p12)
}
 0x22e   : > { %1077 = dma.vmem_to_hbm [thread:$0]  (%p1489_p0), %s1687_s22, 256, %s1685_s23, %s1650_s1, %s1372_s30, %s1372_s30, %s1376_s13  }
 0x22f PF: > { %s878_s14 = sand.u32 1, %s1340_s15   ;;  %p1761_p3 = scmp.ne.s32.totalorder %s1751_s24, 0 }
 0x230   : > { %p1762_p5 = scmp.ge.s32.totalorder %s1360_s20, 2  ;;  %s879_s27 = scalar_lea.sflag [#allocation4], %s878_s14 }
 0x232   : > { %p1090_p7 = pnand %p1762_p5, %p1761_p3 }
 0x234   : > { %p1091_p2 = pneg %p1090_p7 }
 0x236   : > { %1331 = dma.done.wait (%p1091_p2), %s879_s27, 256  }
 0x237   : > { %1333 = vsyncadd (%p1091_p2), %s879_s27, 4294967040  ;;  %s1763_s11 = sadd.s32 4294967294, %s1360_s20  }
 0x238   : > { %s887_s28 = sand.u32 1, %s1763_s11  }
 0x239   : > { %s888_s5 = scalar_lea.sflag [#allocation9], %s887_s28 }
 0x23a   : > { %1335 = dma.done.wait (%p1091_p2), %s888_s5, 512  }
 0x23b   : > { %1337 = vsyncadd (%p1091_p2), %s888_s5, 4294966784  ;;  %s25_s20 = sadd.s32 1, %s1360_s20   ;;  %s1764_s15 = smov %s1344_s16 }
 0x23c   : > { %p22_p0 = scmp.ge.s32.totalorder %s25_s20, 4   ;;  %s1765_s16 = smov %s1348_s17 }
 0x23d   : > { %s1766_s17 = smov %s1498_s26  ;;  %s1767_s18 = smov %s1356_s19 }
 0x23e   : > { %s1768_s19 = smov %s1770_s29  ;;  %24 = sbr.rel (!%p22_p0) target bundleno = 11 (0xb), region = 109 }
 0x243   :  { %902 = vsyncpa [#allocation3], 1 }
 0x244   :  { %904 = vsyncpa [#allocation3 + $0x1], 1 }
 0x245   :  { %905 = vsyncpa [#allocation6], 1 }
 0x246   :  { %906 = vsyncpa [#allocation4], 1 }
 0x247   :  { %908 = vsyncpa [#allocation4 + $0x1], 1 }
 0x248   :  { %909 = vsyncpa [#allocation9], 1 }
 0x249   :  { %911 = vsyncpa [#allocation9 + $0x1], 1 }

</bundles_post_ra>
